<compile_context>
chip_gen: v7x
topology: tpu7x:2x2x1
jax: 0.10.0
libtpu: 0.0.40
codegen_flags: <defaults>
</compile_context>

<pallas_src>
import functools

import jax
import jax.numpy as jnp
from jax import lax
from jax.experimental import pallas as pl
from jax.experimental.pallas import tpu as pltpu

_EPS = 1e-5  # nn.InstanceNorm2d default eps


# --------------------------------------------------------------------------
# Kernels
# --------------------------------------------------------------------------
def _rowwise_kernel(x_ref, g_ref, b_ref, o_ref, *, inv_hw, eps):
    """Normalize `tr` full rows; each row is one (n, c) instance."""
    x = x_ref[...].astype(jnp.float32)
    # Fused single-pass stats (sum & sumsq are independent XLU reductions).
    # NOTE: E[x^2]-mean^2 can lose precision for data with |mean| >> std;
    # max(var, 0) guards against negative round-off.
    s = jnp.sum(x, axis=-1, keepdims=True)
    ss = jnp.sum(x * x, axis=-1, keepdims=True)
    mean = s * inv_hw
    var = jnp.maximum(ss * inv_hw - mean * mean, 0.0)
    inv = lax.rsqrt(var + eps)
    scale = inv * g_ref[...]            # (tr, 1)
    shift = b_ref[...] - mean * scale   # (tr, 1)
    o_ref[...] = (x * scale + shift).astype(o_ref.dtype)


def _twopass_kernel(x_ref, g_ref, b_ref, o_ref, sum_ref, ssq_ref,
                    *, inv_hw, eps, hw, tk, mask_tail):
    """HW-split path for very large spatial sizes.

    Pass 0 accumulates per-row sum / sumsq over HW tiles into VMEM scratch;
    pass 1 normalizes and writes. The output block index is (i, p*k): the
    output buffer stays parked on block (i, 0) during pass 0 and is only
    flushed after pass 1 has written it, so no un-normalized data reaches HBM.
    (Relies on Pallas flushing an output block only when its index changes.)
    """
    p = pl.program_id(1)   # 0 = stats pass, 1 = normalize pass
    k = pl.program_id(2)

    @pl.when(jnp.logical_and(p == 0, k == 0))
    def _():
        sum_ref[...] = jnp.zeros_like(sum_ref)
        ssq_ref[...] = jnp.zeros_like(ssq_ref)

    x = x_ref[...].astype(jnp.float32)

    @pl.when(p == 0)
    def _():
        if mask_tail:
            col = lax.broadcasted_iota(jnp.int32, x.shape, 1) + k * tk
            xm = jnp.where(col < hw, x, 0.0)
        else:
            xm = x
        sum_ref[...] += jnp.sum(xm, axis=-1, keepdims=True)
        ssq_ref[...] += jnp.sum(xm * xm, axis=-1, keepdims=True)

    @pl.when(p == 1)
    def _():
        mean = sum_ref[...] * inv_hw
        var = jnp.maximum(ssq_ref[...] * inv_hw - mean * mean, 0.0)
        inv = lax.rsqrt(var + eps)
        scale = inv * g_ref[...]
        shift = b_ref[...] - mean * scale
        # OOB rows/cols of partial blocks are discarded by Pallas on writeback.
        o_ref[...] = (x * scale + shift).astype(o_ref.dtype)


# --------------------------------------------------------------------------
# Tiling policy helpers
# --------------------------------------------------------------------------
def _sublane_pack(dtype):
    # 8 for 4-byte dtypes, 16 for bf16, 32 for 1-byte.
    return max(8, 32 // jnp.dtype(dtype).itemsize)


def _hw_params():
    """(per-core VMEM capacity bytes, assume multiple TensorCores per chip)."""
    vmem_cap = 128 << 20
    try:
        info = pltpu.get_tpu_info()
        vmem_cap = int(getattr(info, "vmem_capacity_bytes", vmem_cap))
    except Exception:
        pass
    # v7x is the 64 MiB/TC generation and also the 2-TC/chip one.
    multi_tc = vmem_cap <= (64 << 20)
    return vmem_cap, multi_tc


def _tile_vmem_bytes(tr, width, itemsize):
    """Estimated scoped-VMEM use for one (tr, width) tile of x."""
    return (4 * tr * width * itemsize    # x in + out, double-buffered
            + 4 * tr * 512               # gamma/beta (tr,1) f32 blocks, double-buffered
            + 2 * tr * width * 4         # in-kernel f32 intermediates
            + (2 << 20))                 # compiler-internal scratch headroom


def _vmem_limit(est, vmem_cap):
    return int(min(vmem_cap, max(est, 16 << 20)))


# --------------------------------------------------------------------------
# Wrapper
# --------------------------------------------------------------------------
def instance_norm_2d(x_nchw, gamma, beta, *, eps=_EPS, hw_tile=None):
    """InstanceNorm2d(dim, affine=True) over an NCHW tensor via Pallas."""
    n, c, h, w = x_nchw.shape
    hw = h * w
    rows = n * c
    dtype = x_nchw.dtype
    itemsize = jnp.dtype(dtype).itemsize
    pack = _sublane_pack(dtype)

    vmem_cap, multi_tc = _hw_params()
    budget = max(vmem_cap - (24 << 20), 8 << 20)          # leave compile headroom
    tile_bytes_target = (4 << 20) if multi_tc else (8 << 20)

    x2d = x_nchw.reshape(rows, hw)
    # Per-row affine params (gamma[c], beta[c] broadcast over batch), f32.
    g_rows = jnp.broadcast_to(gamma.astype(jnp.float32)[None, :], (n, c)).reshape(rows, 1)
    b_rows = jnp.broadcast_to(beta.astype(jnp.float32)[None, :], (n, c)).reshape(rows, 1)

    base_tr = rows if rows <= pack else pack
    split_hw = (hw_tile is not None) or (_tile_vmem_bytes(base_tr, hw, itemsize) > budget)

    if not split_hw:
        # ---------------- Path A: full rows per tile ----------------
        per_row = 4 * hw * itemsize + 4 * 512 + 2 * hw * 4
        max_tr_budget = max(1, (budget - (2 << 20)) // per_row)
        max_tr_bytes = max(1, tile_bytes_target // max(1, hw * itemsize))
        max_tr = min(rows, max_tr_budget, max_tr_bytes)
        if multi_tc and rows >= 4 * pack:
            # Keep >= 4 grid steps so the "parallel" row axis can shard across
            # both v7x TensorCores.
            # TODO(synk): verify in an xprof trace that dimension_semantics
            # ("parallel",) actually shards across both TCs on v7x; otherwise
            # switch to an explicit core split.
            max_tr = min(max_tr, max(pack, rows // 4))
        tr = rows if rows <= pack else max(pack, (max_tr // pack) * pack)

        kernel = functools.partial(_rowwise_kernel, inv_hw=1.0 / hw, eps=eps)
        out2d = pl.pallas_call(
            kernel,
            out_shape=jax.ShapeDtypeStruct((rows, hw), dtype),
            grid_spec=pltpu.PrefetchScalarGridSpec(
                num_scalar_prefetch=0,
                grid=(pl.cdiv(rows, tr),),
                in_specs=[
                    pl.BlockSpec((tr, hw), lambda i: (i, 0)),
                    pl.BlockSpec((tr, 1), lambda i: (i, 0)),   # gamma sliver
                    pl.BlockSpec((tr, 1), lambda i: (i, 0)),   # beta sliver
                ],
                out_specs=pl.BlockSpec((tr, hw), lambda i: (i, 0)),
            ),
            compiler_params=pltpu.CompilerParams(
                dimension_semantics=("parallel",),
                vmem_limit_bytes=_vmem_limit(_tile_vmem_bytes(tr, hw, itemsize), vmem_cap),
            ),
        )(x2d, g_rows, b_rows)
    else:
        # -------- Path B: split HW (only when pack full rows bust VMEM) --------
        tr = rows if rows <= pack else pack
        if hw_tile is not None:
            tk = int(hw_tile)
            assert tk % 128 == 0, "hw_tile must be a multiple of 128"
        else:
            lane_bytes = tr * 128 * (4 * itemsize + 8)   # per 128-lane chunk in VMEM est
            tk_budget_mult = max(1, (budget - (2 << 20) - 4 * tr * 512) // lane_bytes)
            tk_target_mult = max(1, tile_bytes_target // max(1, tr * 128 * itemsize))
            hw_mult = pl.cdiv(hw, 128)
            tk = 128 * max(1, min(hw_mult, tk_budget_mult, tk_target_mult))
        num_k = pl.cdiv(hw, tk)
        mask_tail = (hw % tk) != 0

        kernel = functools.partial(_twopass_kernel, inv_hw=1.0 / hw, eps=eps,
                                   hw=hw, tk=tk, mask_tail=mask_tail)
        out2d = pl.pallas_call(
            kernel,
            out_shape=jax.ShapeDtypeStruct((rows, hw), dtype),
            grid_spec=pltpu.PrefetchScalarGridSpec(
                num_scalar_prefetch=0,
                grid=(pl.cdiv(rows, tr), 2, num_k),
                in_specs=[
                    pl.BlockSpec((tr, tk), lambda i, p, k: (i, k)),
                    pl.BlockSpec((tr, 1), lambda i, p, k: (i, 0)),
                    pl.BlockSpec((tr, 1), lambda i, p, k: (i, 0)),
                ],
                # (i, p*k): output buffer stays parked on block (i, 0) during
                # pass 0 and is only flushed once pass 1 has written it.
                out_specs=pl.BlockSpec((tr, tk), lambda i, p, k: (i, p * k)),
                scratch_shapes=[pltpu.VMEM((tr, 1), jnp.float32),
                                pltpu.VMEM((tr, 1), jnp.float32)],
            ),
            compiler_params=pltpu.CompilerParams(
                dimension_semantics=("parallel", "arbitrary", "arbitrary"),
                vmem_limit_bytes=_vmem_limit(_tile_vmem_bytes(tr, tk, itemsize), vmem_cap),
            ),
        )(x2d, g_rows, b_rows)

    return out2d.reshape(n, c, h, w)


def pre_norm(x_nchw, gamma, beta, fn=lambda x: x):
    """PreNorm.forward: fn(InstanceNorm2d(x)).

    The normalization hot path runs in the Pallas kernel.
    """
    # TODO(synk): `fn` is an arbitrary wrapped module in the original code; it
    # is applied outside the kernel here (identity by default).
    return fn(instance_norm_2d(x_nchw, gamma, beta))


# --------------------------------------------------------------------------
# Reference + self-test
# --------------------------------------------------------------------------
def _reference_instance_norm(x_nchw, gamma, beta):
    x = x_nchw.astype(jnp.float32)
    mean = jnp.mean(x, axis=(2, 3), keepdims=True)
    var = jnp.mean((x - mean) ** 2, axis=(2, 3), keepdims=True)
    y = (x - mean) * lax.rsqrt(var + _EPS)
    return y * gamma[None, :, None, None] + beta[None, :, None, None]


if __name__ == "__main__":
    key = jax.random.PRNGKey(0)
    kx, kg, kb, kx2, kg2, kb2, kx3 = jax.random.split(key, 7)

    # ------- Path A, f32, rows multiple of pack -------
    N, C, H, W = 2, 4, 16, 16  # dim = C = 4
    x = jax.random.normal(kx, (N, C, H, W), dtype=jnp.float32)
    gamma = 1.0 + 0.1 * jax.random.normal(kg, (C,), dtype=jnp.float32)
    beta = 0.1 * jax.random.normal(kb, (C,), dtype=jnp.float32)
    ref = _reference_instance_norm(x, gamma, beta)

    out = pre_norm(x, gamma, beta, fn=lambda t: t)
    out = jax.block_until_ready(out)
    assert out.shape == (N, C, H, W)
    assert jnp.max(jnp.abs(out.astype(jnp.float32) - ref)) < 1e-4, "Path A mismatch"

    # ------- Path A, ragged rows (N*C = 15, partial last row tile) -------
    N2, C2 = 3, 5
    x_r = jax.random.normal(kx2, (N2, C2, H, W), dtype=jnp.float32)
    gamma2 = 1.0 + 0.1 * jax.random.normal(kg2, (C2,), dtype=jnp.float32)
    beta2 = 0.1 * jax.random.normal(kb2, (C2,), dtype=jnp.float32)
    ref_r = _reference_instance_norm(x_r, gamma2, beta2)
    out_r = jax.block_until_ready(instance_norm_2d(x_r, gamma2, beta2))
    assert jnp.max(jnp.abs(out_r.astype(jnp.float32) - ref_r)) < 1e-4, "ragged-rows mismatch"

    # ------- Path B forced (two-pass HW split), hw divides tk -------
    out_b = jax.block_until_ready(instance_norm_2d(x, gamma, beta, hw_tile=128))
    assert jnp.max(jnp.abs(out_b.astype(jnp.float32) - ref)) < 1e-4, "Path B mismatch"

    # ------- Path B forced with masked tail (hw = 196, not a multiple of 128) -------
    x_t = jax.random.normal(kx3, (N, C, 14, 14), dtype=jnp.float32)
    ref_t = _reference_instance_norm(x_t, gamma, beta)
    out_t = jax.block_until_ready(instance_norm_2d(x_t, gamma, beta, hw_tile=128))
    assert jnp.max(jnp.abs(out_t.astype(jnp.float32) - ref_t)) < 1e-4, "Path B tail mismatch"

    # ------- bf16 I/O (stats still accumulated in f32 in-kernel) -------
    x_bf16 = x.astype(jnp.bfloat16)
    out_bf16 = jax.block_until_ready(instance_norm_2d(x_bf16, gamma, beta))
    ref_bf16 = _reference_instance_norm(x_bf16.astype(jnp.float32), gamma, beta)
    assert out_bf16.dtype == jnp.bfloat16
    assert jnp.max(jnp.abs(out_bf16.astype(jnp.float32) - ref_bf16)) < 6e-2, "bf16 mismatch"

    print("KERNEL_OK")
</pallas_src>

<mosaic_0001>
module attributes {stable_mosaic.version = 11 : i64} {
  func.func @_rowwise_kernel(%arg0: i32, %arg1: memref<8x256xf32, #tpu.memory_space<vmem>>, %arg2: memref<8x1xf32, #tpu.memory_space<vmem>>, %arg3: memref<8x1xf32, #tpu.memory_space<vmem>>, %arg4: memref<8x256xf32, #tpu.memory_space<vmem>>) attributes {dimension_semantics = [#tpu.dimension_semantics<parallel>], iteration_bounds = array<i64: 1>, scalar_prefetch = 0 : i64, scratch_operands = 0 : i64, tpu.core_type = #tpu.core_type<tc>, window_params = [{transform_indices = @transform_0, window_bounds = array<i64: 8, 256>}, {transform_indices = @transform_1, window_bounds = array<i64: 8, 1>}, {transform_indices = @transform_2, window_bounds = array<i64: 8, 1>}, {transform_indices = @transform_3, window_bounds = array<i64: 8, 256>}]} {
    %c0 = arith.constant 0 : index
    %c0_0 = arith.constant 0 : index
    %0 = vector.load %arg1[%c0, %c0_0] : memref<8x256xf32, #tpu.memory_space<vmem>>, vector<8x256xf32>
    %cst = arith.constant dense<0.000000e+00> : vector<8xf32>
    %1 = vector.multi_reduction <add>, %0, %cst [1] : vector<8x256xf32> to vector<8xf32>
    %2 = vector.shape_cast %1 : vector<8xf32> to vector<8x1xf32>
    %3 = arith.mulf %0, %0 : vector<8x256xf32>
    %cst_1 = arith.constant dense<0.000000e+00> : vector<8xf32>
    %4 = vector.multi_reduction <add>, %3, %cst_1 [1] : vector<8x256xf32> to vector<8xf32>
    %5 = vector.shape_cast %4 : vector<8xf32> to vector<8x1xf32>
    %cst_2 = arith.constant 3.906250e-03 : f32
    %6 = vector.broadcast %cst_2 : f32 to vector<8x1xf32>
    %7 = arith.mulf %2, %6 : vector<8x1xf32>
    %cst_3 = arith.constant 3.906250e-03 : f32
    %8 = vector.broadcast %cst_3 : f32 to vector<8x1xf32>
    %9 = arith.mulf %5, %8 : vector<8x1xf32>
    %10 = arith.mulf %7, %7 : vector<8x1xf32>
    %11 = arith.subf %9, %10 : vector<8x1xf32>
    %cst_4 = arith.constant 0.000000e+00 : f32
    %12 = vector.broadcast %cst_4 : f32 to vector<8x1xf32>
    %13 = arith.maximumf %11, %12 : vector<8x1xf32>
    %cst_5 = arith.constant 9.99999974E-6 : f32
    %14 = vector.broadcast %cst_5 : f32 to vector<8x1xf32>
    %15 = arith.addf %13, %14 : vector<8x1xf32>
    %16 = math.rsqrt %15 : vector<8x1xf32>
    %c0_6 = arith.constant 0 : index
    %c0_7 = arith.constant 0 : index
    %17 = vector.load %arg2[%c0_6, %c0_7] : memref<8x1xf32, #tpu.memory_space<vmem>>, vector<8x1xf32>
    %18 = arith.mulf %16, %17 : vector<8x1xf32>
    %c0_8 = arith.constant 0 : index
    %c0_9 = arith.constant 0 : index
    %19 = vector.load %arg3[%c0_8, %c0_9] : memref<8x1xf32, #tpu.memory_space<vmem>>, vector<8x1xf32>
    %20 = arith.mulf %7, %18 : vector<8x1xf32>
    %21 = arith.subf %19, %20 : vector<8x1xf32>
    %22 = vector.broadcast %18 : vector<8x1xf32> to vector<8x256xf32>
    %23 = arith.mulf %0, %22 : vector<8x256xf32>
    %24 = vector.broadcast %21 : vector<8x1xf32> to vector<8x256xf32>
    %25 = arith.addf %23, %24 : vector<8x256xf32>
    %c0_10 = arith.constant 0 : index
    %c0_11 = arith.constant 0 : index
    %26 = vector.load %arg4[%c0_10, %c0_11] : memref<8x256xf32, #tpu.memory_space<vmem>>, vector<8x256xf32>
    tpu.vector_store %arg4[%c0_10, %c0_11], %25 {strides = array<i32>} : memref<8x256xf32, #tpu.memory_space<vmem>>, vector<8x256xf32>,
    return
  }
  func.func @transform_0(%arg0: i32) -> (i32, i32) {
    %c0_i32 = arith.constant 0 : i32
    %c0_i32_0 = arith.constant 0 : i32
    return %arg0, %c0_i32 : i32, i32
  }
  func.func @transform_1(%arg0: i32) -> (i32, i32) {
    %c0_i32 = arith.constant 0 : i32
    %c0_i32_0 = arith.constant 0 : i32
    return %arg0, %c0_i32 : i32, i32
  }
  func.func @transform_2(%arg0: i32) -> (i32, i32) {
    %c0_i32 = arith.constant 0 : i32
    %c0_i32_0 = arith.constant 0 : i32
    return %arg0, %c0_i32 : i32, i32
  }
  func.func @transform_3(%arg0: i32) -> (i32, i32) {
    %c0_i32 = arith.constant 0 : i32
    %c0_i32_0 = arith.constant 0 : i32
    return %arg0, %c0_i32 : i32, i32
  }
}

</mosaic_0001>

<bundles_post_ra>
// kernel: tpu_custom_call.1
= control target key start
LH: loop header
LB: loop body
LE: loop exit
PB: predicated region body
PF: predicated region fallthrough
CT: control target
= control target key end

     0   :  { %s143_s0 = inlined_call_operand.vmem [shape: f32[8,256], index: 0, kind: input, shape index: {}]   ;;  %s144_s1 = inlined_call_operand.vmem [shape: f32[8,1], index: 1, kind: input, shape index: {}]   ;;  %s145_s2 = inlined_call_operand.vmem [shape: f32[8,1], index: 2, kind: input, shape index: {}]   ;;  %s146_s3 = inlined_call_operand.hbm [shape: f32[8,256], index: 3, kind: output, shape index: {}]  }
   0x1   :  { %v15_v0 = vld [vmem:[%s143_s0] sm:$0xff]  ;;  %v16_v1 = vld [vmem:[%s143_s0 + $0x8] sm:$0xff] }
   0x2   :  { %8 = vsyncpa [#allocation3], 0  ;;  %v17_v2 = vadd.f32 %v16_v1, %v15_v0  ;;  %v20_v3 = vmul.f32 %v15_v0, %v15_v0  ;;  %v21_v4 = vmul.f32 %v16_v1, %v16_v1  ;;  %v97_v6 = vmov 0   ;;  %v32_v15 = vld [vmem:[%s144_s1] sm:$0xff]  ;;  %s98_s19 = smov [#allocation2]  }
   0x3   :  { %69 = vset.pattern.permute.xlu1 %v97_v6  ;;  %70 = vset.pattern.permute.xlu0 %v97_v6  ;;  %v34_v18 = vld [vmem:[%s145_s2] sm:$0xff]  ;;  %s59_s20 = sshll.u32 %s98_s19, 4  ;;  %s60_s20 = int_to_ptr.vmem [resolvable:$true] %s59_s20 }
   0x4   :  { %18 = vadd.xlane.f32.xlu0 %v17_v2  ;;  %v22_v5 = vadd.f32 %v21_v4, %v20_v3  ;;  %s73_s1 = scalar_lea.vmem %s60_s20, 256  ;;  %p78_p1 = scmp.lt.s32.totalorder %s60_s20, %s60_s20 }
   0x5   :  { %p74_p0 = scmp.ne.s32.totalorder %s60_s20, %s73_s1  ;;  %p79_p2 = scmp.lt.s32.totalorder %s73_s1, %s73_s1 }
   0x7   :  { %p80_p3 = por %p79_p2, %p78_p1 }
   0x8   :  { %23 = vadd.xlane.f32.xlu0 %v22_v5 }
   0x9   :  { %p81_p4 = pnand %p80_p3, %p74_p0 }
  0x91   :  { %v19_v7 = vpop.xlane.xlu0 %18 }
  0x92   :  { %v25_v8 = vmul.f32 0.00390625, %v19_v7 }
  0x94   :  { %v27_v10 = vmul.f32 %v25_v8, %v25_v8 }
  0x95   :  { %v24_v9 = vpop.xlane.xlu0 %23 }
  0x96   :  { %v26_v11 = vmul.f32 0.00390625, %v24_v9 }
  0x98   :  { %v28_v12 = vsub.f32 %v26_v11, %v27_v10 }
  0x9a   :  { %v29_v13 = vmax.f32 %v28_v12, 0.0 }
  0x9c   :  { %v30_v14 = vadd.f32 1e-05, %v29_v13 }
  0x9e   :  { %71 = vrsqrt.f32 %v30_v14 }
  0xa8   :  { %v72_v16 = vpop.eup %71 }
  0xa9   :  { %v33_v17 = vmul.f32 %v72_v16, %v32_v15 }
  0xab   :  { %39 = vperm.xlu1 %69, %v33_v17   ;;  %v35_v19 = vmul.f32 %v33_v17, %v25_v8 }
  0xad   :  { %v36_v20 = vsub.f32 %v34_v18, %v35_v19 }
  0xaf   :  { %46 = vperm.xlu1 %69, %v36_v20  }
 0x12a   :  { %v40_v21 = vpop.permute.xlu1 %39 }
 0x12b   :  { %v42_v22 = vmul.f32 %v40_v21, %v15_v0  ;;  %v43_v23 = vmul.f32 %v40_v21, %v16_v1 }
 0x12e   :  { %v47_v24 = vpop.permute.xlu1 %46 }
 0x12f   :  { %v49_v25 = vadd.f32 %v47_v24, %v42_v22  ;;  %v50_v26 = vadd.f32 %v47_v24, %v43_v23 }
 0x131   :  { %51 = vst [vmem:[#allocation2] sm:$0xff] %v49_v25  ;;  %52 = vst [vmem:[#allocation2 + $0x8] sm:$0xff] %v50_v26 }
 0x132   :  { %84 = shalt.err (!%p81_p4)
}
 0x133   :  { %s85_s22 = scalar_lea.hbm %s146_s3, 256 }
 0x134   :  { %p86_p5 = scmp.ne.s32.totalorder %s146_s3, %s85_s22  ;;  %p89_p6 = scmp.lt.u32.totalorder %s85_s22, %s146_s3 }
 0x136   :  { %p91_p7 = pnand %p89_p6, %p86_p5 }
 0x138   :  { %94 = shalt.err (!%p91_p7)
}
 0x139   :  { %62 = dma.vmem_to_hbm [thread:$0]  %s60_s20, 256, %s146_s3, [#allocation3]  }
 0x13a   :  { %95 = dma.done.wait [#allocation3], 256  }
 0x13b   :  { %96 = vsyncadd [#allocation3], 4294967040 }
 0x13c   :  { %66 = vsyncpa [#allocation3], 1 }

</bundles_post_ra>
